<compile_context>
chip_gen: v5e
topology: v5e:2x2
jax: 0.10.0
libtpu: 0.0.40
codegen_flags: <defaults>
</compile_context>

<pallas_src>
from functools import lru_cache, partial
from typing import Iterable, Set

import jax
import jax.numpy as jnp
from jax import lax
from jax.experimental import pallas as pl
from jax.experimental.pallas import tpu as pltpu

Word = str

# Rows gathered per grid step (multiple of 8 -> sublane-dense f32 output block).
_MAX_BLOCK_ROWS = 128

# Resident-table fast-path threshold.  Conservative so that the double-buffered
# table plus output blocks fit even under v5e's 16 MiB default scoped-VMEM
# limit and v7x's 64 MiB physical VMEM.  (Could be re-derived per generation
# via pltpu.get_tpu_info().vmem_capacity_bytes to exploit larger budgets.)
_RESIDENT_TABLE_MAX_BYTES = 4 * 1024 * 1024


# ----------------------------- Pallas kernels --------------------------------
def _resident_gather_kernel(idx_ref, table_ref, out_ref, *, block_rows):
    """Whole table resident in VMEM; gather `block_rows` rows per grid step."""
    base = pl.program_id(0) * block_rows

    def body(r, carry):
        out_ref[r, :] = table_ref[idx_ref[base + r], :]
        return carry

    lax.fori_loop(0, block_rows, body, 0)


def _hbm_gather_kernel(idx_ref, table_hbm, out_ref, vbuf, sem, *, block_rows):
    """Table stays in HBM; per grid step issue `block_rows` concurrent row DMAs
    into a VMEM scratch slab, wait for all of them, then one dense store."""
    base = pl.program_id(0) * block_rows

    def issue(r, carry):
        row = idx_ref[base + r]
        pltpu.make_async_copy(table_hbm.at[row], vbuf.at[r], sem).start()
        return carry

    lax.fori_loop(0, block_rows, issue, 0)

    def drain(r, carry):
        # Same-shaped dummy descriptor: only the semaphore / transfer size
        # matter for the wait (all row copies are identical in size).
        pltpu.make_async_copy(table_hbm.at[0], vbuf.at[0], sem).wait()
        return carry

    lax.fori_loop(0, block_rows, drain, 0)

    # Single dense (block_rows, emb_size) store -> unmasked lane/sublane-dense
    # output writeback instead of per-row masked sub-tile stores.
    out_ref[...] = vbuf[...]


# ----------------------------- builders / wrapper -----------------------------
@lru_cache(maxsize=None)
def _build_lookup(vocab_size, emb_size, padded_seq, block_rows, dtype_str,
                  resident):
    dtype = jnp.dtype(dtype_str)
    grid = (padded_seq // block_rows,)

    if resident:
        # Pad the vocab axis to a multiple of 8 so the resident block is tile
        # friendly for dynamic sublane indexing.
        vocab_padded = ((vocab_size + 7) // 8) * 8
        call = pl.pallas_call(
            partial(_resident_gather_kernel, block_rows=block_rows),
            out_shape=jax.ShapeDtypeStruct((padded_seq, emb_size), dtype),
            grid_spec=pltpu.PrefetchScalarGridSpec(
                num_scalar_prefetch=1,            # indices -> SMEM
                grid=grid,
                in_specs=[
                    # Whole table, same block every step -> DMA'd once, reused.
                    pl.BlockSpec((vocab_padded, emb_size),
                                 lambda i, idx: (0, 0)),
                ],
                out_specs=pl.BlockSpec((block_rows, emb_size),
                                       lambda i, idx: (i, 0)),
            ),
            compiler_params=pltpu.CompilerParams(
                dimension_semantics=("parallel",),
                vmem_limit_bytes=32 * 1024 * 1024,
            ),
        )

        def fn(table, idxs):
            if vocab_padded != vocab_size:
                table = jnp.pad(table, ((0, vocab_padded - vocab_size), (0, 0)))
            return call(idxs, table)

        return jax.jit(fn)

    call = pl.pallas_call(
        partial(_hbm_gather_kernel, block_rows=block_rows),
        out_shape=jax.ShapeDtypeStruct((padded_seq, emb_size), dtype),
        grid_spec=pltpu.PrefetchScalarGridSpec(
            num_scalar_prefetch=1,                # indices -> SMEM
            grid=grid,
            in_specs=[pl.BlockSpec(memory_space=pl.ANY)],   # table stays in HBM
            out_specs=pl.BlockSpec((block_rows, emb_size),
                                   lambda i, idx: (i, 0)),
            scratch_shapes=[
                pltpu.VMEM((block_rows, emb_size), dtype),
                pltpu.SemaphoreType.DMA(()),
            ],
        ),
        compiler_params=pltpu.CompilerParams(
            dimension_semantics=("parallel",),
            vmem_limit_bytes=16 * 1024 * 1024,
        ),
    )
    return jax.jit(lambda table, idxs: call(idxs, table))


def embedding_lookup(table: jax.Array, indices: jax.Array) -> jax.Array:
    """Gather rows of `table` at `indices` -> [seq, emb_size] via Pallas."""
    vocab_size, emb_size = table.shape
    seq = int(indices.shape[0])
    if seq == 0:
        return jnp.zeros((0, emb_size), table.dtype)

    # Fixed power-of-two seq buckets (>= 8) so different lengths share compiles.
    bucket = max(8, 1 << max(seq - 1, 0).bit_length())
    block_rows = min(_MAX_BLOCK_ROWS, bucket)   # bucket is a power of 2 >= 8

    idxs = jnp.asarray(indices, dtype=jnp.int32)
    # Range-guard: an OOB index would otherwise drive the DMA source directly.
    idxs = jnp.clip(idxs, 0, vocab_size - 1)
    if bucket != seq:
        idxs = jnp.concatenate([idxs, jnp.zeros((bucket - seq,), jnp.int32)])

    table_bytes = int(vocab_size) * int(emb_size) * jnp.dtype(table.dtype).itemsize
    resident = table_bytes <= _RESIDENT_TABLE_MAX_BYTES

    fn = _build_lookup(int(vocab_size), int(emb_size), int(bucket),
                       int(block_rows), str(jnp.dtype(table.dtype)),
                       bool(resident))
    out = fn(table, idxs)
    return out[:seq]


# --------------------------- Module equivalent --------------------------------
class AtomicEmbedderJAX:
    """JAX/Pallas equivalent of the PyTorch AtomicEmbedder."""

    # TODO(synk): the string vocab -> index mapping is host-side Python glue
    # (no Pallas equivalent); only the embedding row gather runs on TPU.
    def __init__(self, vocab: Set[Word], emb_size: int, case_insensitive=False,
                 key=None):
        self.case_insensitive = case_insensitive
        vocab = set(self.preprocess(x) for x in vocab)
        # Deterministic word -> index mapping (sorted for reproducibility).
        self.word_to_ix = {w: i for i, w in enumerate(sorted(vocab))}
        self.emb_size = emb_size
        if key is None:
            key = jax.random.PRNGKey(0)
        # nn.Embedding default init ~ N(0, 1), float32.
        self.table = jax.random.normal(
            key, (len(self.word_to_ix), emb_size), dtype=jnp.float32
        )

    def preprocess(self, word: Word) -> Word:
        return word.lower() if self.case_insensitive else word

    def forward(self, word: Word) -> jax.Array:
        """Embed a single word -> [emb_size].

        A 1-row pallas_call is dominated by launch/prologue overhead, so the
        single-word path uses a plain XLA row slice (bit-identical result).
        """
        ix = self.word_to_ix[self.preprocess(word)]
        return self.table[ix]

    def forwards(self, words: Iterable[Word]) -> jax.Array:
        """Embed a sequence of words -> [seq, emb_size] (Pallas gather)."""
        ixs = jnp.array(
            [self.word_to_ix[self.preprocess(w)] for w in words],
            dtype=jnp.int32,
        )
        return embedding_lookup(self.table, ixs)

    def embedding_size(self) -> int:
        return self.emb_size


# ---------------------------------- main --------------------------------------
if __name__ == "__main__":
    # --- small demo: resident-table fast path --------------------------------
    vocab = {"the", "cat", "sat", "on", "a", "Mat", "dog", "ran"}
    emb_size = 128
    embedder = AtomicEmbedderJAX(
        vocab, emb_size, case_insensitive=True, key=jax.random.PRNGKey(0)
    )

    words = ["the", "cat", "sat", "on", "a", "mat", "the", "dog"]  # seq = 8

    single = jax.block_until_ready(embedder.forward("Cat"))
    assert single.shape == (emb_size,)

    out = jax.block_until_ready(embedder.forwards(words))
    assert out.shape == (len(words), emb_size)

    ixs = jnp.array(
        [embedder.word_to_ix[embedder.preprocess(w)] for w in words],
        dtype=jnp.int32,
    )
    ref = embedder.table[ixs]
    assert jnp.array_equal(out, ref), "Pallas embedding gather mismatch (fast path)"

    # --- large-vocab check: HBM table + batched manual-DMA gather path -------
    key_t, key_i = jax.random.split(jax.random.PRNGKey(0))
    big_vocab, seq = 16384, 300        # 16384 * 128 * 4 B = 8 MiB > fast-path cap
    big_table = jax.random.normal(key_t, (big_vocab, emb_size), dtype=jnp.float32)
    big_ixs = jax.random.randint(key_i, (seq,), 0, big_vocab, dtype=jnp.int32)

    big_out = jax.block_until_ready(embedding_lookup(big_table, big_ixs))
    assert big_out.shape == (seq, emb_size)
    big_ref = big_table[big_ixs]
    assert jnp.array_equal(big_out, big_ref), "Pallas embedding gather mismatch (HBM path)"

    print("KERNEL_OK")
</pallas_src>

<mosaic_0001>
module attributes {stable_mosaic.version = 11 : i64} {
  func.func @_resident_gather_kernel(%arg0: i32, %arg1: memref<8xi32, #tpu.memory_space<smem>>, %arg2: memref<8x128xf32, #tpu.memory_space<vmem>>, %arg3: memref<8x128xf32, #tpu.memory_space<vmem>>) attributes {dimension_semantics = [#tpu.dimension_semantics<parallel>], iteration_bounds = array<i64: 1>, scalar_prefetch = 1 : i64, scratch_operands = 0 : i64, tpu.core_type = #tpu.core_type<tc>, window_params = [{pipeline_mode = #tpu.pipeline_mode<synchronous>, transform_indices = @transform_0, window_bounds = array<i64: 8, 128>}, {transform_indices = @transform_1, window_bounds = array<i64: 8, 128>}]} {
    %c8_i32 = arith.constant 8 : i32
    %0 = arith.muli %arg0, %c8_i32 : i32
    %c0_i32 = arith.constant 0 : i32
    %c8_i32_0 = arith.constant 8 : i32
    %1 = arith.addi %c0_i32, %c8_i32_0 : i32
    %c1_i32 = arith.constant 1 : i32
    scf.for %arg4 = %c0_i32 to %1 step %c1_i32  : i32 {
      %2 = arith.addi %0, %arg4 : i32
      %3 = arith.index_cast %2 : i32 to index
      %4 = memref.load %arg1[%3] : memref<8xi32, #tpu.memory_space<smem>>
      %5 = arith.index_cast %4 : i32 to index
      %c0 = arith.constant 0 : index
      %6 = vector.load %arg2[%5, %c0] : memref<8x128xf32, #tpu.memory_space<vmem>>, vector<1x128xf32>
      %7 = vector.shape_cast %6 : vector<1x128xf32> to vector<128xf32>
      %8 = arith.index_cast %arg4 : i32 to index
      %c0_2 = arith.constant 0 : index
      %9 = vector.load %arg3[%8, %c0_2] : memref<8x128xf32, #tpu.memory_space<vmem>>, vector<1x128xf32>
      %10 = vector.shape_cast %9 : vector<1x128xf32> to vector<128xf32>
      %11 = vector.shape_cast %7 : vector<128xf32> to vector<1x128xf32>
      tpu.vector_store %arg3[%8, %c0_2], %11 {strides = array<i32>} : memref<8x128xf32, #tpu.memory_space<vmem>>, vector<1x128xf32>,
    }
    %c8_i32_1 = arith.constant 8 : i32
    return
  }
  func.func @transform_0(%arg0: i32, %arg1: memref<8xi32, #tpu.memory_space<smem>>) -> (i32, i32) {
    %c0_i32 = arith.constant 0 : i32
    %c0_i32_0 = arith.constant 0 : i32
    %c0_i32_1 = arith.constant 0 : i32
    return %c0_i32, %c0_i32_0 : i32, i32
  }
  func.func @transform_1(%arg0: i32, %arg1: memref<8xi32, #tpu.memory_space<smem>>) -> (i32, i32) {
    %c0_i32 = arith.constant 0 : i32
    %c0_i32_0 = arith.constant 0 : i32
    return %arg0, %c0_i32 : i32, i32
  }
}

</mosaic_0001>

<bundles_post_ra>
// kernel: fn.1
= control target key start
LH: loop header
LB: loop body
LE: loop exit
PB: predicated region body
PF: predicated region fallthrough
CT: control target
= control target key end

     0   :  { %s154_s12 = smov [#allocation3]   ;;  %s181_s0 = inlined_call_operand.hbm [shape: s32[8], index: 0, kind: input, shape index: {}]   ;;  %s182_s1 = inlined_call_operand.hbm [shape: f32[8,128], index: 1, kind: input, shape index: {}]   ;;  %s183_s2 = inlined_call_operand.hbm [shape: f32[8,128], index: 2, kind: output, shape index: {}]  }
   0x1   :  { %s8_s11 = sshll.u32 %s181_s0, 4  ;;  %s9_s11 = int_to_ptr.hbm [resolvable:$true] %s8_s11 }
   0x2   :  { %11 = dma.hbm_to_smem %s9_s11, 16, %s154_s12, [#allocation2] }
   0x3   :  { %144 = dma.done.wait [#allocation2], 16 }
   0x4   :  { %145 = vsyncadd [#allocation2], 4294967280 }
   0x5   :  { %14 = sfence }
   0x6   :  { %15 = vsyncpa [#allocation5], 0 }
   0x7   :  { %16 = vsyncpa [#allocation6], 0  ;;  %s22_s15 = sshll.u32 %s182_s1, 4  ;;  %s155_s16 = smov [#allocation4]   ;;  %s23_s15 = int_to_ptr.hbm [resolvable:$true] %s22_s15 }
   0x8   :  { %s24_s17 = sshll.u32 %s155_s16, 4  ;;  %s25_s17 = int_to_ptr.vmem [resolvable:$true] %s24_s17 }
   0x9   :  { %27 = dma.hbm_to_vmem [thread:$0]  %s23_s15, 128, %s25_s17, [#allocation5]  }
   0xa   :  { %146 = dma.done.wait [#allocation5], 128  }
   0xb   :  { %147 = vsyncadd [#allocation5], 4294967168  ;;  %s150_s0 = smov 0  }
   0xc LB: > { %s40_s18 = sld [smem:[#allocation3 + %s152_s0]]  ;;  %s43_s20 = scalar_lea.vmem [#allocation7], %s152_s0  ;;  %s152_s0 = sphi %s150_s0, %s38_s0  }
   0xd   : > { %s38_s0 = sadd.s32 1, %s152_s0  }
   0xe   : > { %p35_p0 = scmp.ge.s32.totalorder %s38_s0, 8  }
   0xf   :  { %s52_s22 = sshll.u32 (%p35_p0), %s183_s2, 4  ;;  %s156_s23 = smov (%p35_p0), [#allocation7]   ;;  %s53_s22 = int_to_ptr.hbm [resolvable:$true] %s52_s22 }
  0x10   :  { %37 = sbr.rel (!%p35_p0) target bundleno = 12 (0xc), region = 37  ;;  %s50_s24 = sshll.u32 (%p35_p0), %s156_s23, 4  ;;  %s51_s24 = int_to_ptr.vmem [resolvable:$true] %s50_s24 }
  0x12   : > { %s41_s19 = scalar_lea.vmem [#allocation4], %s40_s18 }
  0x13   : > { %v42_v0 = vld [vmem:[%s41_s19] sm:$0x1] }
  0x14   : > { %44 = vst [vmem:[%s43_s20] sm:$0x1] %v42_v0 }
  0x15   :  { %55 = dma.vmem_to_hbm [thread:$0]  %s51_s24, 128, %s53_s22, [#allocation6]  }
  0x16   :  { %148 = dma.done.wait [#allocation6], 128  }
  0x17   :  { %149 = vsyncadd [#allocation6], 4294967168 }
  0x18   :  { %60 = vsyncpa [#allocation5], 1 }
  0x19   :  { %61 = vsyncpa [#allocation6], 1 }

</bundles_post_ra>
